<compile_context>
chip_gen: v7x
topology: tpu7x:2x2x1
jax: 0.10.0
libtpu: 0.0.40
codegen_flags: <defaults>
</compile_context>

<pallas_src>
import jax
import jax.numpy as jnp
from jax.experimental import pallas as pl
from jax.experimental.pallas import tpu as pltpu

LEAKY_SLOPE = 0.01   # torch.nn.LeakyReLU default
BN_EPS = 1e-5        # nn.BatchNorm1d default


def _round_up(x, m):
    return (x + m - 1) // m * m


def dense_block_kernel(x_ref, w_ref, b_ref, gamma_ref, beta_ref, o_ref, acc_ref):
    k = pl.program_id(1)

    @pl.when(k == 0)
    def _():
        acc_ref[...] = jnp.zeros_like(acc_ref)

    # ---- Linear partial product: bf16 operands, f32 accumulation on the MXU ----
    acc_ref[...] += jnp.dot(x_ref[...], w_ref[...],
                            preferred_element_type=jnp.float32)

    @pl.when(k == pl.num_programs(1) - 1)
    def _():
        # ---- epilogue in f32 (bias + LeakyReLU + BatchNorm1d training stats) ----
        y = acc_ref[...] + b_ref[...]                       # [N, TN]
        y = jnp.where(y >= 0, y, LEAKY_SLOPE * y)           # LeakyReLU(0.01)

        inv_n = 1.0 / y.shape[0]                            # static batch size
        s1 = jnp.sum(y, axis=0, keepdims=True)              # one pass: sum
        s2 = jnp.sum(y * y, axis=0, keepdims=True)          #           sum of squares
        mean = s1 * inv_n
        var = jnp.maximum(s2 * inv_n - mean * mean, 0.0)    # biased batch variance
        inv_std = jax.lax.rsqrt(var + BN_EPS)               # EUP

        out = (y - mean) * (inv_std * gamma_ref[...]) + beta_ref[...]
        o_ref[...] = out.astype(o_ref.dtype)


def dense_block_forward(x, w_t, b, gamma, beta, *, tn=None, tk=None):
    """x: [N, F_in] f32, w_t: [F_in, F_out], b/gamma/beta: [F_out] -> [N, F_out] f32."""
    N, f_in = x.shape
    f_out = w_t.shape[1]

    # Lane-dense padding of both feature axes to multiples of 128.
    f_in_p = _round_up(f_in, 128)
    f_out_p = _round_up(f_out, 128)

    # Tile sizes: as large as possible while keeping the double-buffered working
    # set (x, w, out, acc) comfortably under the v7x-safe 32 MiB scoped VMEM.
    tk = tk if tk is not None else min(f_in_p, 512)
    tn = tn if tn is not None else min(f_out_p, 512)
    f_in_p = _round_up(f_in_p, tk)
    f_out_p = _round_up(f_out_p, tn)

    # Zero-pad + cast MXU operands to bf16; keep per-feature params in f32.
    x_p = jnp.zeros((N, f_in_p), jnp.bfloat16).at[:, :f_in].set(
        x.astype(jnp.bfloat16))
    w_p = jnp.zeros((f_in_p, f_out_p), jnp.bfloat16).at[:f_in, :f_out].set(
        w_t.astype(jnp.bfloat16))
    b_p = jnp.zeros((1, f_out_p), jnp.float32).at[:, :f_out].set(
        b.reshape(1, -1).astype(jnp.float32))
    g_p = jnp.ones((1, f_out_p), jnp.float32).at[:, :f_out].set(
        gamma.reshape(1, -1).astype(jnp.float32))
    bt_p = jnp.zeros((1, f_out_p), jnp.float32).at[:, :f_out].set(
        beta.reshape(1, -1).astype(jnp.float32))

    grid = (f_out_p // tn, f_in_p // tk)   # (feature tiles, K tiles) — K last

    cost = pl.CostEstimate(
        flops=2 * N * f_in_p * f_out_p,
        transcendentals=f_out_p,                             # rsqrt per feature
        bytes_accessed=(x_p.size * 2 * grid[0]               # x re-read per j tile
                        + w_p.size * 2
                        + N * f_out_p * 4
                        + 3 * f_out_p * 4),
    )

    out_p = pl.pallas_call(
        dense_block_kernel,
        out_shape=jax.ShapeDtypeStruct((N, f_out_p), jnp.float32),
        grid_spec=pltpu.PrefetchScalarGridSpec(
            num_scalar_prefetch=0,
            grid=grid,
            in_specs=[
                pl.BlockSpec((N, tk), lambda j, k: (0, k)),    # x   [N, TK]
                pl.BlockSpec((tk, tn), lambda j, k: (k, j)),   # w   [TK, TN]
                pl.BlockSpec((1, tn), lambda j, k: (0, j)),    # bias
                pl.BlockSpec((1, tn), lambda j, k: (0, j)),    # gamma
                pl.BlockSpec((1, tn), lambda j, k: (0, j)),    # beta
            ],
            out_specs=pl.BlockSpec((N, tn), lambda j, k: (0, j)),
            scratch_shapes=[pltpu.VMEM((N, tn), jnp.float32)],  # f32 accumulator
        ),
        compiler_params=pltpu.CompilerParams(
            dimension_semantics=("parallel", "arbitrary"),
            vmem_limit_bytes=32 * 1024 * 1024,
        ),
        cost_estimate=cost,
    )(x_p, w_p, b_p, g_p, bt_p)

    return out_p[:, :f_out]


def reference_forward(x, w_t, b, gamma, beta):
    """Pure-JAX reference mirroring the PyTorch forward (same bf16 MXU operands)."""
    y = jnp.dot(x.astype(jnp.bfloat16), w_t.astype(jnp.bfloat16),
                preferred_element_type=jnp.float32) + b.reshape(1, -1)
    y = jnp.where(y >= 0, y, LEAKY_SLOPE * y)
    mean = jnp.mean(y, axis=0, keepdims=True)
    var = jnp.mean((y - mean) ** 2, axis=0, keepdims=True)
    return ((y - mean) * jax.lax.rsqrt(var + BN_EPS) * gamma.reshape(1, -1)
            + beta.reshape(1, -1))


if __name__ == "__main__":
    key = jax.random.PRNGKey(0)
    k_x, k_w, k_b = jax.random.split(key, 3)

    # Small shapes consistent with the module: batch=8, in=16, out=32.
    N, F_IN, F_OUT = 8, 16, 32

    x = jax.random.normal(k_x, (N, F_IN), dtype=jnp.float32)

    # PyTorch Linear default init: U(-1/sqrt(in), 1/sqrt(in)).
    bound = 1.0 / (F_IN ** 0.5)
    w = jax.random.uniform(k_w, (F_OUT, F_IN), jnp.float32, -bound, bound)
    b = jax.random.uniform(k_b, (F_OUT,), jnp.float32, -bound, bound)
    w_t = jnp.transpose(w)                     # [F_in, F_out]

    # BatchNorm1d affine params: gamma=1, beta=0 (PyTorch defaults, training mode).
    gamma = jnp.ones((F_OUT,), dtype=jnp.float32)
    beta = jnp.zeros((F_OUT,), dtype=jnp.float32)

    out = dense_block_forward(x, w_t, b, gamma, beta)
    jax.block_until_ready(out)

    ref = reference_forward(x, w_t, b, gamma, beta)
    assert out.shape == (N, F_OUT)
    assert jnp.allclose(out, ref, atol=1e-3, rtol=1e-3), "mismatch vs reference"

    print("KERNEL_OK")
</pallas_src>

<mosaic_0001>
module attributes {stable_mosaic.version = 11 : i64} {
  func.func @dense_block_kernel(%arg0: i32, %arg1: i32, %arg2: memref<8x128xbf16, #tpu.memory_space<vmem>>, %arg3: memref<128x128xbf16, #tpu.memory_space<vmem>>, %arg4: memref<1x128xf32, #tpu.memory_space<vmem>>, %arg5: memref<1x128xf32, #tpu.memory_space<vmem>>, %arg6: memref<1x128xf32, #tpu.memory_space<vmem>>, %arg7: memref<8x128xf32, #tpu.memory_space<vmem>>, %arg8: memref<8x128xf32, #tpu.memory_space<vmem>>) attributes {dimension_semantics = [#tpu.dimension_semantics<parallel>, #tpu.dimension_semantics<arbitrary>], iteration_bounds = array<i64: 1, 1>, scalar_prefetch = 0 : i64, scratch_operands = 1 : i64, tpu.core_type = #tpu.core_type<tc>, window_params = [{transform_indices = @transform_0, window_bounds = array<i64: 8, 128>}, {transform_indices = @transform_1, window_bounds = array<i64: 128, 128>}, {transform_indices = @transform_2, window_bounds = array<i64: 1, 128>}, {transform_indices = @transform_3, window_bounds = array<i64: 1, 128>}, {transform_indices = @transform_4, window_bounds = array<i64: 1, 128>}, {transform_indices = @transform_5, window_bounds = array<i64: 8, 128>}]} {
    %c0_i32 = arith.constant 0 : i32
    %0 = arith.cmpi eq, %arg1, %c0_i32 : i32
    %1 = arith.extui %0 : i1 to i32
    %c0_i32_0 = arith.constant 0 : i32
    %2 = arith.cmpi ne, %1, %c0_i32_0 : i32
    scf.if %2 {
      %cst_10 = arith.constant 0.000000e+00 : f32
      %12 = vector.broadcast %cst_10 : f32 to vector<8x128xf32>
      %c0_11 = arith.constant 0 : index
      %c0_12 = arith.constant 0 : index
      %13 = vector.load %arg8[%c0_11, %c0_12] : memref<8x128xf32, #tpu.memory_space<vmem>>, vector<8x128xf32>
      tpu.vector_store %arg8[%c0_11, %c0_12], %12 {strides = array<i32>} : memref<8x128xf32, #tpu.memory_space<vmem>>, vector<8x128xf32>,
    } else {
    }
    %c0 = arith.constant 0 : index
    %c0_1 = arith.constant 0 : index
    %3 = vector.load %arg8[%c0, %c0_1] : memref<8x128xf32, #tpu.memory_space<vmem>>, vector<8x128xf32>
    %c0_2 = arith.constant 0 : index
    %c0_3 = arith.constant 0 : index
    %4 = vector.load %arg2[%c0_2, %c0_3] : memref<8x128xbf16, #tpu.memory_space<vmem>>, vector<8x128xbf16>
    %c0_4 = arith.constant 0 : index
    %c0_5 = arith.constant 0 : index
    %5 = vector.load %arg3[%c0_4, %c0_5] : memref<128x128xbf16, #tpu.memory_space<vmem>>, vector<128x128xbf16>
    %cst = arith.constant dense<0.000000e+00> : vector<8x128xf32>
    %6 = tpu.matmul %4, %5, %cst {dimension_numbers = #tpu.dot_dimension_numbers<[1], [0], [0], [1], [0, 0, 1, 1], [], []>} : vector<8x128xbf16>, vector<128x128xbf16>, vector<8x128xf32> -> vector<8x128xf32>
    %7 = arith.addf %3, %6 : vector<8x128xf32>
    %c0_6 = arith.constant 0 : index
    %c0_7 = arith.constant 0 : index
    %8 = vector.load %arg8[%c0_6, %c0_7] : memref<8x128xf32, #tpu.memory_space<vmem>>, vector<8x128xf32>
    tpu.vector_store %arg8[%c0_6, %c0_7], %7 {strides = array<i32>} : memref<8x128xf32, #tpu.memory_space<vmem>>, vector<8x128xf32>,
    %c0_i32_8 = arith.constant 0 : i32
    %9 = arith.cmpi eq, %arg1, %c0_i32_8 : i32
    %10 = arith.extui %9 : i1 to i32
    %c0_i32_9 = arith.constant 0 : i32
    %11 = arith.cmpi ne, %10, %c0_i32_9 : i32
    scf.if %11 {
      %c0_10 = arith.constant 0 : index
      %c0_11 = arith.constant 0 : index
      %12 = vector.load %arg8[%c0_10, %c0_11] : memref<8x128xf32, #tpu.memory_space<vmem>>, vector<8x128xf32>
      %c0_12 = arith.constant 0 : index
      %c0_13 = arith.constant 0 : index
      %13 = vector.load %arg4[%c0_12, %c0_13] : memref<1x128xf32, #tpu.memory_space<vmem>>, vector<1x128xf32>
      %14 = vector.broadcast %13 : vector<1x128xf32> to vector<8x128xf32>
      %15 = arith.addf %12, %14 : vector<8x128xf32>
      %cst_14 = arith.constant 0.000000e+00 : f32
      %16 = vector.broadcast %cst_14 : f32 to vector<8x128xf32>
      %17 = arith.cmpf oge, %15, %16 : vector<8x128xf32>
      %cst_15 = arith.constant 0.00999999977 : f32
      %18 = vector.broadcast %cst_15 : f32 to vector<8x128xf32>
      %19 = arith.mulf %18, %15 : vector<8x128xf32>
      %20 = arith.select %17, %15, %19 : vector<8x128xi1>, vector<8x128xf32>
      %cst_16 = arith.constant dense<0.000000e+00> : vector<128xf32>
      %21 = vector.multi_reduction <add>, %20, %cst_16 [0] : vector<8x128xf32> to vector<128xf32>
      %22 = vector.shape_cast %21 : vector<128xf32> to vector<1x128xf32>
      %23 = arith.mulf %20, %20 : vector<8x128xf32>
      %cst_17 = arith.constant dense<0.000000e+00> : vector<128xf32>
      %24 = vector.multi_reduction <add>, %23, %cst_17 [0] : vector<8x128xf32> to vector<128xf32>
      %25 = vector.shape_cast %24 : vector<128xf32> to vector<1x128xf32>
      %cst_18 = arith.constant 1.250000e-01 : f32
      %26 = vector.broadcast %cst_18 : f32 to vector<1x128xf32>
      %27 = arith.mulf %22, %26 : vector<1x128xf32>
      %cst_19 = arith.constant 1.250000e-01 : f32
      %28 = vector.broadcast %cst_19 : f32 to vector<1x128xf32>
      %29 = arith.mulf %25, %28 : vector<1x128xf32>
      %30 = arith.mulf %27, %27 : vector<1x128xf32>
      %31 = arith.subf %29, %30 : vector<1x128xf32>
      %cst_20 = arith.constant 0.000000e+00 : f32
      %32 = vector.broadcast %cst_20 : f32 to vector<1x128xf32>
      %33 = arith.maximumf %31, %32 : vector<1x128xf32>
      %cst_21 = arith.constant 9.99999974E-6 : f32
      %34 = vector.broadcast %cst_21 : f32 to vector<1x128xf32>
      %35 = arith.addf %33, %34 : vector<1x128xf32>
      %36 = math.rsqrt %35 : vector<1x128xf32>
      %37 = vector.broadcast %27 : vector<1x128xf32> to vector<8x128xf32>
      %38 = arith.subf %20, %37 : vector<8x128xf32>
      %c0_22 = arith.constant 0 : index
      %c0_23 = arith.constant 0 : index
      %39 = vector.load %arg5[%c0_22, %c0_23] : memref<1x128xf32, #tpu.memory_space<vmem>>, vector<1x128xf32>
      %40 = arith.mulf %36, %39 : vector<1x128xf32>
      %41 = vector.broadcast %40 : vector<1x128xf32> to vector<8x128xf32>
      %42 = arith.mulf %38, %41 : vector<8x128xf32>
      %c0_24 = arith.constant 0 : index
      %c0_25 = arith.constant 0 : index
      %43 = vector.load %arg6[%c0_24, %c0_25] : memref<1x128xf32, #tpu.memory_space<vmem>>, vector<1x128xf32>
      %44 = vector.broadcast %43 : vector<1x128xf32> to vector<8x128xf32>
      %45 = arith.addf %42, %44 : vector<8x128xf32>
      %c0_26 = arith.constant 0 : index
      %c0_27 = arith.constant 0 : index
      %46 = vector.load %arg7[%c0_26, %c0_27] : memref<8x128xf32, #tpu.memory_space<vmem>>, vector<8x128xf32>
      tpu.vector_store %arg7[%c0_26, %c0_27], %45 {strides = array<i32>} : memref<8x128xf32, #tpu.memory_space<vmem>>, vector<8x128xf32>,
    } else {
    }
    return
  }
  func.func @transform_0(%arg0: i32, %arg1: i32) -> (i32, i32) {
    %c0_i32 = arith.constant 0 : i32
    %c0_i32_0 = arith.constant 0 : i32
    return %c0_i32, %arg1 : i32, i32
  }
  func.func @transform_1(%arg0: i32, %arg1: i32) -> (i32, i32) {
    %c0_i32 = arith.constant 0 : i32
    return %arg1, %arg0 : i32, i32
  }
  func.func @transform_2(%arg0: i32, %arg1: i32) -> (i32, i32) {
    %c0_i32 = arith.constant 0 : i32
    %c0_i32_0 = arith.constant 0 : i32
    return %c0_i32, %arg0 : i32, i32
  }
  func.func @transform_3(%arg0: i32, %arg1: i32) -> (i32, i32) {
    %c0_i32 = arith.constant 0 : i32
    %c0_i32_0 = arith.constant 0 : i32
    return %c0_i32, %arg0 : i32, i32
  }
  func.func @transform_4(%arg0: i32, %arg1: i32) -> (i32, i32) {
    %c0_i32 = arith.constant 0 : i32
    %c0_i32_0 = arith.constant 0 : i32
    return %c0_i32, %arg0 : i32, i32
  }
  func.func @transform_5(%arg0: i32, %arg1: i32) -> (i32, i32) {
    %c0_i32 = arith.constant 0 : i32
    %c0_i32_0 = arith.constant 0 : i32
    return %c0_i32, %arg0 : i32, i32
  }
}

</mosaic_0001>

<bundles_post_ra>
// kernel: tpu_custom_call.1
= control target key start
LH: loop header
LB: loop body
LE: loop exit
PB: predicated region body
PF: predicated region fallthrough
CT: control target
= control target key end

     0   :  { %10 = vsyncpa [#allocation4], 0  ;;  %s446_s0 = inlined_call_operand.hbm [shape: bf16[8,128], index: 0, kind: input, shape index: {}]   ;;  %s447_s1 = inlined_call_operand.hbm [shape: bf16[128,128], index: 1, kind: input, shape index: {}]   ;;  %s448_s2 = inlined_call_operand.vmem [shape: f32[1,128], index: 2, kind: input, shape index: {}]   ;;  %s449_s3 = inlined_call_operand.vmem [shape: f32[1,128], index: 3, kind: input, shape index: {}]   ;;  %s450_s4 = inlined_call_operand.vmem [shape: f32[1,128], index: 4, kind: input, shape index: {}]   ;;  %s451_s5 = inlined_call_operand.hbm [shape: f32[8,128], index: 5, kind: output, shape index: {}]  }
   0x1   :  { %11 = vsyncpa [#allocation7], 0 }
   0x2   :  { %12 = vsyncpa [#allocation5], 0  ;;  %s357_s18 = smov [#allocation3]   ;;  %s358_s20 = smov [#allocation6]  }
   0x3   :  { %s19_s19 = sshll.u32 %s357_s18, 4  ;;  %s28_s21 = sshll.u32 %s358_s20, 4  ;;  %s20_s19 = int_to_ptr.vmem [resolvable:$true] %s19_s19  ;;  %s394_s21 = int_to_ptr.vmem [resolvable:$true] %s28_s21 }
   0x4   :  { %s285_s24 = scalar_lea.hbm %s446_s0, 64 }
   0x5   :  { %p286_p0 = scmp.ne.s32.totalorder %s446_s0, %s285_s24  ;;  %p289_p1 = scmp.lt.u32.totalorder %s285_s24, %s446_s0 }
   0x7   :  { %p291_p2 = pnand %p289_p1, %p286_p0 }
   0x9   :  { %294 = shalt.err (!%p291_p2)
}
   0xa   :  { %s295_s29 = scalar_lea.vmem %s20_s19, 64  ;;  %p300_p4 = scmp.lt.s32.totalorder %s20_s19, %s20_s19 }
   0xb   :  { %p296_p3 = scmp.ne.s32.totalorder %s20_s19, %s295_s29  ;;  %p301_p5 = scmp.lt.s32.totalorder %s295_s29, %s295_s29 }
   0xd   :  { %p302_p6 = por %p301_p5, %p300_p4 }
   0xf   :  { %p303_p7 = pnand %p302_p6, %p296_p3 }
  0x11   :  { %306 = shalt.err (!%p303_p7)
}
  0x12   :  { %22 = dma.hbm_to_vmem [thread:$0]  %s446_s0, 64, %s20_s19, [#allocation4]  }
  0x13   :  { %s307_s9 = scalar_lea.hbm %s447_s1, 1024 }
  0x14   :  { %p308_p8 = scmp.ne.s32.totalorder %s447_s1, %s307_s9  ;;  %p311_p9 = scmp.lt.u32.totalorder %s307_s9, %s447_s1 }
  0x16   :  { %p313_p10 = pnand %p311_p9, %p308_p8 }
  0x18   :  { %316 = shalt.err (!%p313_p10)
}
  0x19   :  { %s317_s14 = scalar_lea.vmem %s394_s21, 1024  ;;  %p322_p12 = scmp.lt.s32.totalorder %s394_s21, %s394_s21 }
  0x1a   :  { %p318_p11 = scmp.ne.s32.totalorder %s394_s21, %s317_s14  ;;  %p323_p13 = scmp.lt.s32.totalorder %s317_s14, %s317_s14 }
  0x1c   :  { %p324_p0 = por %p323_p13, %p322_p12 }
  0x1e   :  { %p325_p1 = pnand %p324_p0, %p318_p11 }
  0x20   :  { %328 = shalt.err (!%p325_p1)
}
  0x21   :  { %s359_s0 = smov 64   ;;  %s360_s15 = smov 4  }
  0x22   :  { %34 = dma.hbm_to_vmem [thread:$0]  %s447_s1, 1024, %s394_s21, [#allocation7], %s359_s0, %s359_s0, %s360_s15  }
  0x23   :  { %351 = dma.done.wait [#allocation4], 64  }
  0x24   :  { %352 = vsyncadd [#allocation4], 4294967232 }
  0x25   :  { %353 = dma.done.wait [#allocation7], 1024  }
  0x26   :  { %354 = vsyncadd [#allocation7], 4294966272  ;;  %v361_v0 = vmov 0.0   ;;  %vm362_vm0 = vmmov 0   ;;  %v275_v1 = vld [vmem:[#allocation6] sm:$0xff]   ;;  %v276_v2 = vld [vmem:[#allocation6 + $0x8] sm:$0xff]   ;;  %v199_v37 = vlaneseq }
  0x27   :  { %248 = vmatprep.subr.bf16.mxu0 %v361_v0  ;;  %264 = vmatprep.mubr.msk.bf16.mxu0 %vm362_vm0, %v361_v0  ;;  %v277_v3 = vld [vmem:[#allocation6 + $0x10] sm:$0xff]   ;;  %v278_v4 = vld [vmem:[#allocation6 + $0x18] sm:$0xff]   ;;  %v279_v5 = vld [vmem:[#allocation6 + $0x20] sm:$0xff]   ;;  %s363_s22 = smov [#allocation8]  }
  0x28   :  { %249 = vmatpush3.bf16.msra.mxu0 %v275_v1  ;;  %v280_v6 = vld [vmem:[#allocation6 + $0x28] sm:$0xff]   ;;  %v281_v7 = vld [vmem:[#allocation6 + $0x30] sm:$0xff]   ;;  %v282_v8 = vld [vmem:[#allocation6 + $0x38] sm:$0xff]   ;;  %v200_v38 = vshrl.u32 %v199_v37, 7  ;;  %s219_s23 = sshll.u32 %s363_s22, 4  ;;  %s220_s23 = int_to_ptr.vmem [resolvable:$true] %s219_s23 }
  0x29   :  { %250 = vmatprep.subr.bf16.mxu0 %v361_v0  ;;  %v54_v9 = vld [vmem:[#allocation3] sm:$0xf]  ;;  %s329_s24 = scalar_lea.vmem %s220_s23, 128  ;;  %p334_p3 = scmp.lt.s32.totalorder %s220_s23, %s220_s23 }
  0x2a   :  { %v237_v10 = vld [vmem:[%s448_s2] ss:$0 sm:$0xff]  ;;  %v201_v40 = vsub.s32 0, %v200_v38  ;;  %p330_p2 = scmp.ne.s32.totalorder %s220_s23, %s329_s24  ;;  %p335_p4 = scmp.lt.s32.totalorder %s329_s24, %s329_s24 }
  0x2b   :  { %v197_v39 = vld [vmem:[%s449_s3] sm:$0x1] }
  0x2c   :  { %251 = vmatpush3.bf16.msra.mxu0 %v276_v2  ;;  %v238_v45 = vld [vmem:[%s450_s4] ss:$0 sm:$0xff]  ;;  %p336_p5 = por %p335_p4, %p334_p3 }
  0x2d   :  { %252 = vmatprep.subr.bf16.mxu0 %v361_v0 }
  0x2e   :  { %p337_p6 = pnand %p336_p5, %p330_p2 }
  0x30   :  { %253 = vmatpush3.bf16.msra.mxu0 %v277_v3 }
  0x31   :  { %254 = vmatprep.subr.bf16.mxu0 %v361_v0 }
  0x34   :  { %255 = vmatpush3.bf16.msra.mxu0 %v278_v4 }
  0x35   :  { %256 = vmatprep.subr.bf16.mxu0 %v361_v0 }
  0x38   :  { %257 = vmatpush3.bf16.msra.mxu0 %v279_v5 }
  0x39   :  { %258 = vmatprep.subr.bf16.mxu0 %v361_v0 }
  0x3c   :  { %259 = vmatpush3.bf16.msra.mxu0 %v280_v6 }
  0x3d   :  { %260 = vmatprep.subr.bf16.mxu0 %v361_v0 }
  0x40   :  { %261 = vmatpush3.bf16.msra.mxu0 %v281_v7 }
  0x41   :  { %262 = vmatprep.subr.bf16.mxu0 %v361_v0 }
  0x44   :  { %263 = vmatpush3.bf16.msra.mxu0 %v282_v8 }
  0x47   :  { %265 = vmatmul.mubr.bf16.vlgmr.msra.gmra.mrb[0].mxu0 %v54_v9 }
 0x11a   :  { %v153_v11 = vpop.f32.mrb[0].mxu0 }
 0x11b   :  { %v172_v12 = vadd.f32 %v237_v10, %v153_v11  ;;  %v266_v13 = vpop.f32.mrb[1].mxu0 }
 0x11c   :  { %v156_v14 = vpop.f32.mrb[2].mxu0 }
 0x11d   :  { %vm173_vm1 = vcmp.ge.f32.partialorder %v172_v12, 0.0  ;;  %v174_v15 = vmul.f32 0.01, %v172_v12  ;;  %v267_v16 = vpop.f32.mrb[3].mxu0 }
 0x11f   :  { %v175_v17 = vsel %vm173_vm1, %v172_v12, %v174_v15 }
 0x120   :  { %v176_v18 = vrot.slane %v175_v17, 4  ;;  %v182_v19 = vmul.f32 %v175_v17, %v175_v17 }
 0x122   :  { %v177_v20 = vadd.f32 %v176_v18, %v175_v17  ;;  %v183_v21 = vrot.slane %v182_v19, 4 }
 0x124   :  { %v178_v22 = vrot.slane %v177_v20, 2  ;;  %v184_v23 = vadd.f32 %v183_v21, %v182_v19 }
 0x126   :  { %v179_v24 = vadd.f32 %v178_v22, %v177_v20  ;;  %v185_v25 = vrot.slane %v184_v23, 2 }
 0x128   :  { %v186_v26 = vadd.f32 %v185_v25, %v184_v23  ;;  %v180_v27 = vrot.slane %v179_v24, 1 }
 0x12a   :  { %v187_v28 = vrot.slane %v186_v26, 1  ;;  %v181_v29 = vadd.f32 %v180_v27, %v179_v24 }
 0x12c   :  { %v188_v30 = vadd.f32 %v187_v28, %v186_v26  ;;  %v189_v31 = vmul.f32 0.125, %v181_v29 }
 0x12e   :  { %v190_v32 = vmul.f32 0.125, %v188_v30  ;;  %v191_v33 = vmul.f32 %v189_v31, %v189_v31  ;;  %v196_v43 = vsub.f32 %v175_v17, %v189_v31 }
 0x130   :  { %v192_v34 = vsub.f32 %v190_v32, %v191_v33 }
 0x132   :  { %v193_v35 = vmax.f32 %v192_v34, 0.0 }
 0x134   :  { %v194_v36 = vadd.f32 1e-05, %v193_v35 }
 0x136   :  { %283 = vrsqrt.f32 %v194_v36 }
 0x140   :  { %v284_v41 = vpop.eup %283 }
 0x141   :  { %v198_v42 = vmul.f32 %v284_v41, %v197_v39 }
 0x143   :  { %v202_v44 = vrot.slane %v198_v42, %v201_v40 }
 0x145   :  { %v203_v46 = vmul.f32 %v202_v44, %v196_v43 }
 0x147   :  { %v211_v47 = vadd.f32 %v238_v45, %v203_v46 }
 0x149   :  { %212 = vst [vmem:[#allocation8] sm:$0xff] %v211_v47 }
 0x14a   :  { %340 = shalt.err (!%p337_p6)
}
 0x14b   :  { %s341_s26 = scalar_lea.hbm %s451_s5, 128 }
 0x14c   :  { %p342_p7 = scmp.ne.s32.totalorder %s451_s5, %s341_s26  ;;  %p345_p8 = scmp.lt.u32.totalorder %s341_s26, %s451_s5 }
 0x14e   :  { %p347_p9 = pnand %p345_p8, %p342_p7 }
 0x150   :  { %350 = shalt.err (!%p347_p9)
}
 0x151   :  { %222 = dma.vmem_to_hbm [thread:$0]  %s220_s23, 128, %s451_s5, [#allocation5]  }
 0x152   :  { %355 = dma.done.wait [#allocation5], 128  }
 0x153   :  { %356 = vsyncadd [#allocation5], 4294967168 }
 0x154   :  { %226 = vsyncpa [#allocation4], 1 }
 0x155   :  { %227 = vsyncpa [#allocation7], 1 }
 0x156   :  { %228 = vsyncpa [#allocation5], 1 }

</bundles_post_ra>
